<compile_context>
chip_gen: v7x
topology: tpu7x:2x2x1
jax: 0.10.0
libtpu: 0.0.40
codegen_flags: <defaults>
</compile_context>

<pallas_src>
import functools

import jax
import jax.numpy as jnp
from jax.experimental import pallas as pl
from jax.experimental.pallas import tpu as pltpu


# ---------------- model configuration (3D hyper-elasticity PINN) -------------
NUM_HIDDEN_LAYERS = 4      # -> 3 "hidden" Linear layers + 1 output Linear
NUM_NEURONS = 32
NINPUTS = 3                # (x, y, z) coordinates
NOUTPUTS = 3               # (u, v, w) displacements
NUM_MID = NUM_HIDDEN_LAYERS - 2   # number of hidden->hidden linears


def _round_up(x, m):
    return (x + m - 1) // m * m


def _mlp_kernel(x_ref, w0_ref, b0_ref, wh_ref, bh_ref, wo_ref, bo_ref, o_ref,
                *, num_mid):
    """Feature-major MLP forward for one batch tile (batch on the lane axis).

    x_ref : (NIN, TILE)
    w0_ref: (H, NIN)          b0_ref: (H, 1)
    wh_ref: (num_mid, H, H)   bh_ref: (num_mid, H, 1)
    wo_ref: (NOUT, H)         bo_ref: (NOUT, 1)
    o_ref : (NOUT, TILE)
    """
    x = x_ref[...].astype(jnp.float32)

    # first hidden layer + tanh:  h = tanh(W0 @ x + b0)   -> (H, TILE)
    h = jnp.tanh(
        jnp.dot(w0_ref[...], x, preferred_element_type=jnp.float32)
        + b0_ref[...]
    )

    # remaining hidden layers (static Python loop -> fully unrolled)
    for l in range(num_mid):
        h = jnp.tanh(
            jnp.dot(wh_ref[l], h, preferred_element_type=jnp.float32)
            + bh_ref[l]
        )

    # output layer (no activation): (NOUT, TILE), lane-dense store
    out = (
        jnp.dot(wo_ref[...], h, preferred_element_type=jnp.float32)
        + bo_ref[...]
    )
    o_ref[...] = out.astype(o_ref.dtype)


def net_forward(inputs, params, *, tile_m=2048):
    """Pallas implementation of Net.forward.

    inputs : list of (N, k_i) arrays, concatenated along dim=1 (like torch.cat)
    params : dict with w0 (nin,H), b0 (1,H), wh (L,H,H), bh (L,1,H),
             wo (H,nout), bo (1,nout)
    returns: (N, noutputs)
    """
    # torch.cat(inputs, dim=1) then go feature-major (batch on lanes).
    x = jnp.concatenate(inputs, axis=1)                    # (N, nin)
    n, nin = x.shape
    xt = x.T.astype(jnp.float32)                           # (nin, N)

    # Transposed ("out_features, in_features") weights; lane-broadcast biases.
    w0t = params["w0"].T                                   # (H, nin)
    b0t = params["b0"].reshape(-1, 1)                      # (H, 1)
    wht = jnp.transpose(params["wh"], (0, 2, 1))           # (L, H, H)
    bht = params["bh"].reshape(params["bh"].shape[0], -1, 1)  # (L, H, 1)
    wot = params["wo"].T                                   # (nout, H)
    bot = params["bo"].reshape(-1, 1)                      # (nout, 1)

    h = w0t.shape[0]
    nout = wot.shape[0]
    num_mid = wht.shape[0]

    # Batch tiling on the lane axis: fat tiles (amortize per-step overhead),
    # but keep >= 2 grid steps when possible so v7x's two TensorCores both
    # get work on the "parallel" axis.
    n_lane = _round_up(max(n, 1), 128)
    g = pl.cdiv(n_lane, tile_m)
    if n_lane > 128:
        g = max(g, 2)
    tile = _round_up(pl.cdiv(n_lane, g), 128)
    n_pad = g * tile
    if n_pad != n:
        xt = jnp.pad(xt, ((0, 0), (0, n_pad - n)))

    kernel = functools.partial(_mlp_kernel, num_mid=num_mid)

    flops = 2 * n_pad * (nin * h + num_mid * h * h + h * nout)
    transcendentals = n_pad * h * (1 + num_mid)
    bytes_accessed = 4 * n_pad * (nin + nout) + 4 * int(
        w0t.size + b0t.size + wht.size + bht.size + wot.size + bot.size
    )

    out_t = pl.pallas_call(
        kernel,
        out_shape=jax.ShapeDtypeStruct((nout, n_pad), x.dtype),
        grid=(g,),
        in_specs=[
            pl.BlockSpec((nin, tile), lambda i: (0, i)),           # x tile
            pl.BlockSpec((h, nin), lambda i: (0, 0)),              # w0^T
            pl.BlockSpec((h, 1), lambda i: (0, 0)),                # b0
            pl.BlockSpec((num_mid, h, h), lambda i: (0, 0, 0)),    # hidden W^T
            pl.BlockSpec((num_mid, h, 1), lambda i: (0, 0, 0)),    # hidden b
            pl.BlockSpec((nout, h), lambda i: (0, 0)),             # wo^T
            pl.BlockSpec((nout, 1), lambda i: (0, 0)),             # bo
        ],
        out_specs=pl.BlockSpec((nout, tile), lambda i: (0, i)),
        compiler_params=pltpu.CompilerParams(
            dimension_semantics=("parallel",)
        ),
        cost_estimate=pl.CostEstimate(
            flops=flops,
            transcendentals=transcendentals,
            bytes_accessed=bytes_accessed,
        ),
    )(xt, w0t, b0t, wht, bht, wot, bot)

    # Drop batch padding, return batch-major like the PyTorch module.
    return out_t[:, :n].T                                  # (N, nout)


def init_params(key):
    """Deterministic parameter init (uniform, like nn.Linear default scale)."""
    ks = jax.random.split(key, 8)

    def uniform(k, shape, fan_in):
        bound = 1.0 / jnp.sqrt(float(fan_in))
        return jax.random.uniform(k, shape, jnp.float32, -bound, bound)

    w0 = uniform(ks[0], (NINPUTS, NUM_NEURONS), NINPUTS)
    b0 = uniform(ks[1], (1, NUM_NEURONS), NINPUTS)
    wh = uniform(ks[2], (NUM_MID, NUM_NEURONS, NUM_NEURONS), NUM_NEURONS)
    bh = uniform(ks[3], (NUM_MID, 1, NUM_NEURONS), NUM_NEURONS)
    wo = uniform(ks[4], (NUM_NEURONS, NOUTPUTS), NUM_NEURONS)
    bo = uniform(ks[5], (1, NOUTPUTS), NUM_NEURONS)
    return {"w0": w0, "b0": b0, "wh": wh, "bh": bh, "wo": wo, "bo": bo}


def net_forward_ref(inputs, params):
    """Pure-JAX reference (mirrors the PyTorch forward, batch-major)."""
    x = jnp.concatenate(inputs, axis=1)
    h = jnp.tanh(x @ params["w0"] + params["b0"])
    for l in range(params["wh"].shape[0]):
        h = jnp.tanh(h @ params["wh"][l] + params["bh"][l])
    return h @ params["wo"] + params["bo"]


if __name__ == "__main__":
    key = jax.random.PRNGKey(0)
    k_par, k_x, k_y, k_z = jax.random.split(key, 4)

    params = init_params(k_par)

    # Small batch of 3D collocation points; forward takes a list of tensors
    # that are concatenated along dim=1 (here: x, y, z columns).
    N = 256
    xs = jax.random.uniform(k_x, (N, 1), jnp.float32)
    ys = jax.random.uniform(k_y, (N, 1), jnp.float32)
    zs = jax.random.uniform(k_z, (N, 1), jnp.float32)
    inputs = [xs, ys, zs]

    out = net_forward(inputs, params, tile_m=2048)
    out = jax.block_until_ready(out)

    ref = net_forward_ref(inputs, params)
    assert out.shape == (N, NOUTPUTS)
    assert jnp.allclose(out, ref, atol=1e-5, rtol=1e-5)

    print("KERNEL_OK")
</pallas_src>

<mosaic_0001>
module attributes {stable_mosaic.version = 11 : i64} {
  func.func @_mlp_kernel(%arg0: i32, %arg1: memref<3x128xf32, #tpu.memory_space<vmem>>, %arg2: memref<32x3xf32, #tpu.memory_space<vmem>>, %arg3: memref<32x1xf32, #tpu.memory_space<vmem>>, %arg4: memref<2x32x32xf32, #tpu.memory_space<vmem>>, %arg5: memref<2x32x1xf32, #tpu.memory_space<vmem>>, %arg6: memref<3x32xf32, #tpu.memory_space<vmem>>, %arg7: memref<3x1xf32, #tpu.memory_space<vmem>>, %arg8: memref<3x128xf32, #tpu.memory_space<vmem>>) attributes {dimension_semantics = [#tpu.dimension_semantics<parallel>], iteration_bounds = array<i64: 2>, scalar_prefetch = 0 : i64, scratch_operands = 0 : i64, tpu.core_type = #tpu.core_type<tc>, window_params = [{transform_indices = @transform_0, window_bounds = array<i64: 3, 128>}, {pipeline_mode = #tpu.pipeline_mode<synchronous>, transform_indices = @transform_1, window_bounds = array<i64: 32, 3>}, {pipeline_mode = #tpu.pipeline_mode<synchronous>, transform_indices = @transform_2, window_bounds = array<i64: 32, 1>}, {pipeline_mode = #tpu.pipeline_mode<synchronous>, transform_indices = @transform_3, window_bounds = array<i64: 2, 32, 32>}, {pipeline_mode = #tpu.pipeline_mode<synchronous>, transform_indices = @transform_4, window_bounds = array<i64: 2, 32, 1>}, {pipeline_mode = #tpu.pipeline_mode<synchronous>, transform_indices = @transform_5, window_bounds = array<i64: 3, 32>}, {pipeline_mode = #tpu.pipeline_mode<synchronous>, transform_indices = @transform_6, window_bounds = array<i64: 3, 1>}, {transform_indices = @transform_7, window_bounds = array<i64: 3, 128>}]} {
    %c0 = arith.constant 0 : index
    %c0_0 = arith.constant 0 : index
    %0 = vector.load %arg1[%c0, %c0_0] : memref<3x128xf32, #tpu.memory_space<vmem>>, vector<3x128xf32>
    %c0_1 = arith.constant 0 : index
    %c0_2 = arith.constant 0 : index
    %1 = vector.load %arg2[%c0_1, %c0_2] : memref<32x3xf32, #tpu.memory_space<vmem>>, vector<32x3xf32>
    %cst = arith.constant dense<0.000000e+00> : vector<32x128xf32>
    %2 = tpu.matmul %1, %0, %cst {dimension_numbers = #tpu.dot_dimension_numbers<[1], [0], [0], [1], [0, 0, 1, 1], [], []>} : vector<32x3xf32>, vector<3x128xf32>, vector<32x128xf32> -> vector<32x128xf32>
    %c0_3 = arith.constant 0 : index
    %c0_4 = arith.constant 0 : index
    %3 = vector.load %arg3[%c0_3, %c0_4] : memref<32x1xf32, #tpu.memory_space<vmem>>, vector<32x1xf32>
    %4 = vector.broadcast %3 : vector<32x1xf32> to vector<32x128xf32>
    %5 = arith.addf %2, %4 : vector<32x128xf32>
    %6 = math.tanh %5 : vector<32x128xf32>
    %c0_5 = arith.constant 0 : index
    %c0_6 = arith.constant 0 : index
    %c0_7 = arith.constant 0 : index
    %7 = vector.load %arg4[%c0_5, %c0_6, %c0_7] : memref<2x32x32xf32, #tpu.memory_space<vmem>>, vector<1x32x32xf32>
    %8 = vector.shape_cast %7 : vector<1x32x32xf32> to vector<32x32xf32>
    %cst_8 = arith.constant dense<0.000000e+00> : vector<32x128xf32>
    %9 = tpu.matmul %8, %6, %cst_8 {dimension_numbers = #tpu.dot_dimension_numbers<[1], [0], [0], [1], [0, 0, 1, 1], [], []>} : vector<32x32xf32>, vector<32x128xf32>, vector<32x128xf32> -> vector<32x128xf32>
    %c0_9 = arith.constant 0 : index
    %c0_10 = arith.constant 0 : index
    %c0_11 = arith.constant 0 : index
    %10 = vector.load %arg5[%c0_9, %c0_10, %c0_11] : memref<2x32x1xf32, #tpu.memory_space<vmem>>, vector<1x32x1xf32>
    %11 = vector.shape_cast %10 : vector<1x32x1xf32> to vector<32x1xf32>
    %12 = vector.broadcast %11 : vector<32x1xf32> to vector<32x128xf32>
    %13 = arith.addf %9, %12 : vector<32x128xf32>
    %14 = math.tanh %13 : vector<32x128xf32>
    %c1 = arith.constant 1 : index
    %c0_12 = arith.constant 0 : index
    %c0_13 = arith.constant 0 : index
    %15 = vector.load %arg4[%c1, %c0_12, %c0_13] : memref<2x32x32xf32, #tpu.memory_space<vmem>>, vector<1x32x32xf32>
    %16 = vector.shape_cast %15 : vector<1x32x32xf32> to vector<32x32xf32>
    %cst_14 = arith.constant dense<0.000000e+00> : vector<32x128xf32>
    %17 = tpu.matmul %16, %14, %cst_14 {dimension_numbers = #tpu.dot_dimension_numbers<[1], [0], [0], [1], [0, 0, 1, 1], [], []>} : vector<32x32xf32>, vector<32x128xf32>, vector<32x128xf32> -> vector<32x128xf32>
    %c1_15 = arith.constant 1 : index
    %c0_16 = arith.constant 0 : index
    %c0_17 = arith.constant 0 : index
    %18 = vector.load %arg5[%c1_15, %c0_16, %c0_17] : memref<2x32x1xf32, #tpu.memory_space<vmem>>, vector<1x32x1xf32>
    %19 = vector.shape_cast %18 : vector<1x32x1xf32> to vector<32x1xf32>
    %20 = vector.broadcast %19 : vector<32x1xf32> to vector<32x128xf32>
    %21 = arith.addf %17, %20 : vector<32x128xf32>
    %22 = math.tanh %21 : vector<32x128xf32>
    %c0_18 = arith.constant 0 : index
    %c0_19 = arith.constant 0 : index
    %23 = vector.load %arg6[%c0_18, %c0_19] : memref<3x32xf32, #tpu.memory_space<vmem>>, vector<3x32xf32>
    %cst_20 = arith.constant dense<0.000000e+00> : vector<3x128xf32>
    %24 = tpu.matmul %23, %22, %cst_20 {dimension_numbers = #tpu.dot_dimension_numbers<[1], [0], [0], [1], [0, 0, 1, 1], [], []>} : vector<3x32xf32>, vector<32x128xf32>, vector<3x128xf32> -> vector<3x128xf32>
    %c0_21 = arith.constant 0 : index
    %c0_22 = arith.constant 0 : index
    %25 = vector.load %arg7[%c0_21, %c0_22] : memref<3x1xf32, #tpu.memory_space<vmem>>, vector<3x1xf32>
    %26 = vector.broadcast %25 : vector<3x1xf32> to vector<3x128xf32>
    %27 = arith.addf %24, %26 : vector<3x128xf32>
    %c0_23 = arith.constant 0 : index
    %c0_24 = arith.constant 0 : index
    %28 = vector.load %arg8[%c0_23, %c0_24] : memref<3x128xf32, #tpu.memory_space<vmem>>, vector<3x128xf32>
    tpu.vector_store %arg8[%c0_23, %c0_24], %27 {strides = array<i32>} : memref<3x128xf32, #tpu.memory_space<vmem>>, vector<3x128xf32>,
    return
  }
  func.func @transform_0(%arg0: i32) -> (i32, i32) {
    %c0_i32 = arith.constant 0 : i32
    %c0_i32_0 = arith.constant 0 : i32
    return %c0_i32, %arg0 : i32, i32
  }
  func.func @transform_1(%arg0: i32) -> (i32, i32) {
    %c0_i32 = arith.constant 0 : i32
    %c0_i32_0 = arith.constant 0 : i32
    %c0_i32_1 = arith.constant 0 : i32
    return %c0_i32, %c0_i32_0 : i32, i32
  }
  func.func @transform_2(%arg0: i32) -> (i32, i32) {
    %c0_i32 = arith.constant 0 : i32
    %c0_i32_0 = arith.constant 0 : i32
    %c0_i32_1 = arith.constant 0 : i32
    return %c0_i32, %c0_i32_0 : i32, i32
  }
  func.func @transform_3(%arg0: i32) -> (i32, i32, i32) {
    %c0_i32 = arith.constant 0 : i32
    %c0_i32_0 = arith.constant 0 : i32
    %c0_i32_1 = arith.constant 0 : i32
    %c0_i32_2 = arith.constant 0 : i32
    return %c0_i32, %c0_i32_0, %c0_i32_1 : i32, i32, i32
  }
  func.func @transform_4(%arg0: i32) -> (i32, i32, i32) {
    %c0_i32 = arith.constant 0 : i32
    %c0_i32_0 = arith.constant 0 : i32
    %c0_i32_1 = arith.constant 0 : i32
    %c0_i32_2 = arith.constant 0 : i32
    return %c0_i32, %c0_i32_0, %c0_i32_1 : i32, i32, i32
  }
  func.func @transform_5(%arg0: i32) -> (i32, i32) {
    %c0_i32 = arith.constant 0 : i32
    %c0_i32_0 = arith.constant 0 : i32
    %c0_i32_1 = arith.constant 0 : i32
    return %c0_i32, %c0_i32_0 : i32, i32
  }
  func.func @transform_6(%arg0: i32) -> (i32, i32) {
    %c0_i32 = arith.constant 0 : i32
    %c0_i32_0 = arith.constant 0 : i32
    %c0_i32_1 = arith.constant 0 : i32
    return %c0_i32, %c0_i32_0 : i32, i32
  }
  func.func @transform_7(%arg0: i32) -> (i32, i32) {
    %c0_i32 = arith.constant 0 : i32
    %c0_i32_0 = arith.constant 0 : i32
    return %c0_i32, %arg0 : i32, i32
  }
}

</mosaic_0001>

<bundles_post_ra>
// kernel: tpu_custom_call.1
= control target key start
LH: loop header
LB: loop body
LE: loop exit
PB: predicated region body
PF: predicated region fallthrough
CT: control target
= control target key end

     0   :  { %12 = vsyncpa [#allocation3], 0  ;;  %s1320_s0 = inlined_call_operand.vmem [shape: f32[3,256], index: 0, kind: input, shape index: {}]   ;;  %s1321_s1 = inlined_call_operand.vmem [shape: f32[32,3], index: 1, kind: input, shape index: {}]   ;;  %s1322_s2 = inlined_call_operand.vmem [shape: f32[32,1], index: 2, kind: input, shape index: {}]   ;;  %s1323_s3 = inlined_call_operand.vmem [shape: f32[2,32,32], index: 3, kind: input, shape index: {}]   ;;  %s1324_s4 = inlined_call_operand.vmem [shape: f32[2,32,1], index: 4, kind: input, shape index: {}]   ;;  %s1325_s5 = inlined_call_operand.vmem [shape: f32[3,32], index: 5, kind: input, shape index: {}]   ;;  %s1326_s6 = inlined_call_operand.vmem [shape: f32[3,1], index: 6, kind: input, shape index: {}]   ;;  %s1327_s7 = inlined_call_operand.hbm [shape: f32[3,256], index: 7, kind: output, shape index: {}]  }
   0x1   :  { %14 = vsyncpa [#allocation3 + $0x1], 0  ;;  %s1129_s24 = smov 0   ;;  %s1131_s25 = smov 0  }
   0x2   :  { %s1133_s26 = smov 0   ;;  %s1135_s27 = smov 0  }
   0x3 LB: > { %s1150_s28 = sadd.s32 4294967295, %s1082_s27   ;;  %s824_s29 = sadd.s32 4294967294, %s1082_s27   ;;  %s1082_s27 = sphi %s1135_s27, %s1333_s27   ;;  %s1078_s26 = sphi %s1133_s26, %s1332_s26   ;;  %s1074_s25 = sphi %s1131_s25, %s1331_s25   ;;  %s1070_s24 = sphi %s1129_s24, %s1330_s24  }
   0x4   : > { %s1154_s30 = sadd.s32 1, %s1082_s27   ;;  %s179_s8 = sadd.s32 1, %s1078_s26 }
   0x5   : > { %s176_s9 = ssub.s32 %s1082_s27, %s1154_s30  ;;  %p189_p0 = scmp.ne.s32.totalorder %s1078_s26, %s1074_s25 }
   0x6   : > { %p177_p1 = scmp.eq.s32.totalorder %s176_s9, 0  ;;  %p190_p2 = scmp.eq.s32.totalorder %s1150_s28, 1 }
   0x7   : > { %p195_p3 = scmp.ne.s32.totalorder %s1074_s25, %s1070_s24  ;;  %p196_p4 = scmp.eq.s32.totalorder %s824_s29, 1 }
   0x8   : > { %s1165_s10 = scalar_select %p177_p1, %s1078_s26, %s179_s8  }
   0x9   : > { %p1167_p5 = por %p190_p2, %p189_p0  ;;  %p1171_p6 = por %p196_p4, %p195_p3 }
   0xa   : > { %p827_p7 = scmp.ge.s32.totalorder %s1082_s27, 1  ;;  %p239_p8 = scmp.lt.s32.totalorder %s1082_s27, 3 }
   0xc   : > { %p240_p9 = pnand %p827_p7, %p239_p8 }
   0xd   : > { %p270_p10 = scmp.lt.s32.totalorder (!%p240_p9), %s1150_s28, 1  ;;  %v275_v0 = vld [vmem:[%s1321_s1] sm:$0xff] (!%p240_p9)  ;;  %vm303_vm0 = vcmask (!%p240_p9), 23552   ;;  %v1084_v2 = vmov (!%p240_p9), 0   ;;  %v281_v3 = vld [vmem:[%s1322_s2 + $0x10] sm:$0xff] (!%p240_p9)  ;;  %vm316_vm1 = vcmask (!%p240_p9), 1042432  }
   0xe   : > { %243 = sbr.rel (%p240_p9) target bundleno = 963 (0x3c3), region = 48  ;;  %884 = vmatprep.mubr.msk.f32.mxu0 (!%p240_p9), %vm303_vm0, %v275_v0  ;;  %v279_v1 = vld [vmem:[%s1322_s2] sm:$0xff] (!%p240_p9)  ;;  %994 = vset.pattern.permute.xlu0 (!%p240_p9), %v1084_v2  ;;  %v280_v4 = vld [vmem:[%s1322_s2 + $0x8] sm:$0xff] (!%p240_p9)  ;;  %v282_v5 = vld [vmem:[%s1322_s2 + $0x18] sm:$0xff] (!%p240_p9)  ;;  %vm437_vm2 = vcmask (!%p240_p9), 261120   ;;  %v1085_v63 = vmov (!%p240_p9), 0.0|0.0  }
   0xf   : > { %995 = vset.pattern.permute.xlu1 (!%p240_p9), %v1084_v2  ;;  %285 = vperm.xlu0 (!%p240_p9), %994, %v279_v1   ;;  %v276_v7 = vld [vmem:[%s1321_s1 + $0x8] sm:$0xff] (!%p240_p9)  ;;  %v277_v8 = vld [vmem:[%s1321_s1 + $0x10] sm:$0xff] (!%p240_p9)  ;;  %v413_v9 = vld [vmem:[%s1324_s4] sm:$0xff] (!%p240_p9)  ;;  %vm1086_vm3 = vmmov (!%p240_p9), 0   ;;  %v1087_v0 = vmov (!%p240_p9), 0.0   ;;  %s267_s14 = sand.u32 (!%p240_p9), 1, %s1074_s25  }
  0x10   : > { %295 = vperm.xlu1 (!%p240_p9), %995, %v281_v3   ;;  %v414_v10 = vld [vmem:[%s1324_s4 + $0x8] sm:$0xff] (!%p240_p9)  ;;  %v278_v11 = vld [vmem:[%s1321_s1 + $0x18] sm:$0xff] (!%p240_p9)  ;;  %v415_v12 = vld [vmem:[%s1324_s4 + $0x10] sm:$0xff] (!%p240_p9)  ;;  %s828_s15 = sshll.u32 (!%p240_p9), %s267_s14, 2  ;;  %s853_s16 = sshll.u32 (!%p240_p9), %s1150_s28, 6 }
  0x11   : > { %v416_v13 = vld [vmem:[%s1324_s4 + $0x18] sm:$0xff] (!%p240_p9)  ;;  %v843_v14 = vld [vmem:[%s1324_s4 + $0x20] sm:$0xff] (!%p240_p9)  ;;  %v844_v15 = vld [vmem:[%s1324_s4 + $0x28] sm:$0xff] (!%p240_p9)  ;;  %s1278_s21 = scalar_lea.hbm (!%p240_p9), %s1327_s7, %s853_s16  ;;  %s752_s22 = scalar_lea.sflag (!%p240_p9), [#allocation3], %s267_s14 }
  0x12   : > { %v845_v16 = vld [vmem:[%s1324_s4 + $0x30] sm:$0xff] (!%p240_p9)  ;;  %v846_v17 = vld [vmem:[%s1324_s4 + $0x38] sm:$0xff] (!%p240_p9)  ;;  %v671_v18 = vld [vmem:[%s1326_s6] sm:$0x7] (!%p240_p9) }
  0x13   : > { %290 = vperm.xlu0 (!%p240_p9), %994, %v280_v4   ;;  %v409_v19 = vld [vmem:[%s1323_s3] sm:$0xff] (!%p240_p9)  ;;  %v410_v38 = vld [vmem:[%s1323_s3 + $0x8] sm:$0xff] (!%p240_p9)  ;;  %v411_v39 = vld [vmem:[%s1323_s3 + $0x10] sm:$0xff] (!%p240_p9) }
  0x14   : > { %300 = vperm.xlu1 (!%p240_p9), %995, %v282_v5   ;;  %898 = vmatprep.mubr.msk.f32.mxu1 (!%p240_p9), %vm437_vm2, %v409_v19  ;;  %v412_v40 = vld [vmem:[%s1323_s3 + $0x18] sm:$0xff] (!%p240_p9)  ;;  %v839_v41 = vld [vmem:[%s1323_s3 + $0x20] sm:$0xff] (!%p240_p9)  ;;  %v840_v60 = vld [vmem:[%s1323_s3 + $0x28] sm:$0xff] (!%p240_p9) }
  0x15   : > { %s271_s17 = scalar_select %p270_p10, %s1150_s28, 1  ;;  %v841_v61 = vld [vmem:[%s1323_s3 + $0x30] sm:$0xff]  ;;  %v842_v62 = vld [vmem:[%s1323_s3 + $0x38] sm:$0xff]  ;;  %v670_v19 = vld [vmem:[%s1325_s5] sm:$0x7] }
  0x16   : > { %s1088_s28 = smov [#allocation2]  }
  0x17   : > { %s829_s20 = sshll.u32 %s271_s17, 2  ;;  %419 = vperm.xlu0 %994, %v413_v9   ;;  %s269_s17 = scalar_lea.vmem [#allocation2], %s828_s15 }
  0x18   : > { %s273_s8 = scalar_lea.vmem %s1320_s0, %s829_s20  ;;  %424 = vperm.xlu1 %995, %v414_v10   ;;  %s765_s18 = sshll.u32 %s269_s17, 4  ;;  %s1280_s18 = int_to_ptr.vmem [resolvable:$true] %s765_s18 }
  0x19   : > { %v274_v6 = vld [vmem:[%s273_s8] sm:$0x7]  ;;  %s1020_s23 = scalar_lea.vmem %s1280_s18, 64  ;;  %s1024_s29 = sshll.u32 %s1088_s28, 4  ;;  %s1025_s29 = int_to_ptr.vmem [resolvable:$false] %s1024_s29 }
  0x1a   : > { %882 = vmatprep.subr.msk.mxu0 %vm316_vm1, %v274_v6  ;;  %p1021_p11 = scmp.ne.s32.totalorder %s1280_s18, %s1020_s23  ;;  %s1026_s8 = scalar_lea.vmem %s1025_s29, 128 }
  0x1b   : > { %883 = vmatpush3.msk.msra.mxu0 %vm316_vm1, %v274_v6  ;;  %429 = vperm.xlu0 %994, %v415_v12   ;;  %p1027_p0 = scmp.lt.s32.totalorder %s1280_s18, %s1025_s29  ;;  %p1028_p1 = scmp.lt.s32.totalorder %s1026_s8, %s1020_s23 }
  0x1c   : > { %885 = vmatmul.mubr.msk.f32.vlgmr.msra.gmra.mrb[0].mxu0 %vm303_vm0, %v276_v7  ;;  %434 = vperm.xlu1 %995, %v416_v13   ;;  %p1022_p12 = pnand %p1021_p11, %p1167_p5 }
  0x1d   : > { %887 = vmatprep.mubr.msk.f32.mxu0 %vm303_vm0, %v277_v8  ;;  %p1029_p2 = por %p1028_p1, %p1027_p0 }
  0x1e   : > { %p1023_p13 = pneg %p1022_p12 }
  0x1f   : > { %551 = vperm.xlu0 %994, %v843_v14  }
  0x20   : > { %888 = vmatmul.mubr.msk.f32.gmra.mrb[2].mxu0 %vm303_vm0, %v278_v11  ;;  %556 = vperm.xlu1 %995, %v844_v15   ;;  %p1030_p3 = pnand %p1029_p2, %p1023_p13 }
  0x21   : > { %912 = vmatprep.mubr.msk.f32.mxu0 %vm437_vm2, %v839_v41 }
  0x23   : > { %561 = vperm.xlu0 %994, %v845_v16  }
  0x24   : > { %566 = vperm.xlu1 %995, %v846_v17  }
  0x27   : > { %674 = vperm.xlu0 %994, %v671_v18  }
  0x8e   : > { %v286_v20 = vpop.permute.xlu0 %285 }
  0x8f   : > { %v296_v21 = vpop.permute.xlu1 %295 }
  0x92   : > { %v291_v22 = vpop.permute.xlu0 %290 }
  0x93   : > { %v301_v27 = vpop.permute.xlu1 %300 }
  0x96   : > { %v420_v43 = vpop.permute.xlu0 %419 }
  0x97   : > { %v425_v42 = vpop.permute.xlu1 %424 }
  0x9a   : > { %v430_v50 = vpop.permute.xlu0 %429 }
  0x9b   : > { %v435_v48 = vpop.permute.xlu1 %434 }
  0x9e   : > { %v552_v2 = vpop.permute.xlu0 %551 }
  0x9f   : > { %v557_v1 = vpop.permute.xlu1 %556 }
  0xa2   : > { %v562_v9 = vpop.permute.xlu0 %561 }
  0xa3   : > { %v567_v7 = vpop.permute.xlu1 %566 }
  0xef   : > { %v886_v23 = vpop.f32.mrb[0].mxu0 }
  0xf0   : > { %v392_v24 = vadd.f32 %v886_v23, %v291_v22  ;;  %v386_v25 = vpop.f32.mrb[1].mxu0 }
  0xf1   : > { %v387_v26 = vadd.f32 %v386_v25, %v286_v20  ;;  %v675_v20 = vpop.permute.xlu0 %674 }
  0xf2   : > { %996 = vtanh.f32 %v392_v24 }
  0xf3   : > { %998 = vtanh.f32 %v387_v26  ;;  %v889_v28 = vpop.f32.mrb[2].mxu0 }
  0xf4   : > { %v402_v29 = vadd.f32 %v889_v28, %v301_v27  ;;  %v396_v30 = vpop.f32.mrb[3].mxu0 }
  0xf5   : > { %v397_v31 = vadd.f32 %v396_v30, %v296_v21 }
  0xf6   : > { %1000 = vtanh.f32 %v402_v29 }
  0xf7   : > { %1002 = vtanh.f32 %v397_v31 }
  0xfc   : > { %v997_v32 = vpop.eup %996 }
  0xfd   : > { %v999_v33 = vpop.eup %998 }
  0xfe   : > { %v929_v34 = vpack.c.bf16 %v997_v32, %v999_v33 }
 0x100   : > { %v1001_v35 = vpop.eup %1000  ;;  %930 = vmatprep.subr.bf16.mxu1 %v929_v34 }
 0x101   : > { %v1003_v36 = vpop.eup %1002  ;;  %932 = vmatpush3.bf16.msra.mxu1 %v929_v34 }
 0x102   : > { %v933_v37 = vpack.c.bf16 %v1001_v35, %v1003_v36 }
 0x104   : > { %934 = vmatprep.subr.bf16.mxu1 %v933_v37 }
 0x105   : > { %936 = vmatpush3.bf16.msra.mxu1 %v933_v37 }
 0x106   : > { %945 = vmatprep.subr.bf16.mxu1 %v1085_v63 }
 0x108   : > { %899 = vmatmul.mubr.msk.f32.vlgmr.msra.gmra.mrb[0].mxu1 %vm437_vm2, %v410_v38 }
 0x109   : > { %901 = vmatprep.mubr.msk.f32.mxu1 %vm437_vm2, %v411_v39 }
 0x10c   : > { %902 = vmatmul.mubr.msk.f32.gmra.mrb[2].mxu1 %vm437_vm2, %v412_v40 }
 0x10d   : > { %926 = vmatprep.mubr.msk.f32.mxu1 %vm1086_vm3, %v1087_v0 }
 0x1db   : > { %v900_v44 = vpop.f32.mrb[0].mxu1 }
 0x1dc   : > { %v522_v45 = vadd.f32 %v900_v44, %v425_v42  ;;  %v516_v46 = vpop.f32.mrb[1].mxu1 }
 0x1dd   : > { %v517_v47 = vadd.f32 %v516_v46, %v420_v43 }
 0x1de   : > { %1004 = vtanh.f32 %v522_v45 }
 0x1df   : > { %1006 = vtanh.f32 %v517_v47  ;;  %v903_v49 = vpop.f32.mrb[2].mxu1 }
 0x1e0   : > { %v532_v51 = vadd.f32 %v903_v49, %v435_v48  ;;  %v526_v52 = vpop.f32.mrb[3].mxu1 }
 0x1e1   : > { %v527_v53 = vadd.f32 %v526_v52, %v430_v50 }
 0x1e2   : > { %1008 = vtanh.f32 %v532_v51 }
 0x1e3   : > { %1010 = vtanh.f32 %v527_v53 }
 0x1e8   : > { %v1005_v54 = vpop.eup %1004 }
 0x1e9   : > { %v1007_v55 = vpop.eup %1006 }
 0x1ea   : > { %v937_v56 = vpack.c.bf16 %v1005_v54, %v1007_v55 }
 0x1ec   : > { %v1009_v57 = vpop.eup %1008  ;;  %938 = vmatprep.subr.bf16.mxu0 %v937_v56 }
 0x1ed   : > { %v1011_v58 = vpop.eup %1010  ;;  %940 = vmatpush3.bf16.msra.mxu0 %v937_v56 }
 0x1ee   : > { %v941_v59 = vpack.c.bf16 %v1009_v57, %v1011_v58 }
 0x1f0   : > { %942 = vmatprep.subr.bf16.mxu0 %v941_v59 }
 0x1f1   : > { %944 = vmatpush3.bf16.msra.mxu0 %v941_v59 }
 0x1f4   : > { %913 = vmatmul.mubr.msk.f32.vlgmr.msra.gmra.mrb[4].mxu0 %vm437_vm2, %v840_v60 }
 0x1f5   : > { %915 = vmatprep.mubr.msk.f32.mxu0 %vm437_vm2, %v841_v61 }
 0x1f8   : > { %916 = vmatmul.mubr.msk.f32.gmra.mrb[6].mxu0 %vm437_vm2, %v842_v62 }
 0x2c7   : > { %v914_v3 = vpop.f32.mrb[4].mxu0 }
 0x2c8   : > { %v653_v4 = vadd.f32 %v914_v3, %v557_v1  ;;  %v647_v5 = vpop.f32.mrb[5].mxu0 }
 0x2c9   : > { %v648_v6 = vadd.f32 %v647_v5, %v552_v2 }
 0x2ca   : > { %1012 = vtanh.f32 %v653_v4 }
 0x2cb   : > { %1014 = vtanh.f32 %v648_v6  ;;  %v917_v8 = vpop.f32.mrb[6].mxu0 }
 0x2cc   : > { %v663_v10 = vadd.f32 %v917_v8, %v567_v7  ;;  %v657_v11 = vpop.f32.mrb[7].mxu0 }
 0x2cd   : > { %v658_v12 = vadd.f32 %v657_v11, %v562_v9 }
 0x2ce   : > { %1016 = vtanh.f32 %v663_v10 }
 0x2cf   : > { %1018 = vtanh.f32 %v658_v12 }
 0x2d4   : > { %v1013_v13 = vpop.eup %1012 }
 0x2d5   : > { %v1015_v14 = vpop.eup %1014 }
 0x2d6   : > { %v946_v15 = vpack.c.bf16 %v1013_v13, %v1015_v14 }
 0x2d8   : > { %v1017_v16 = vpop.eup %1016  ;;  %947 = vmatpush3.bf16.msra.mxu1 %v946_v15 }
 0x2d9   : > { %v1019_v17 = vpop.eup %1018  ;;  %948 = vmatprep.subr.bf16.mxu1 %v1085_v63 }
 0x2da   : > { %v949_v18 = vpack.c.bf16 %v1017_v16, %v1019_v17 }
 0x2dc   : > { %950 = vmatpush3.bf16.msra.mxu1 %v949_v18 }
 0x2df   : > { %927 = vmatmul.mubr.msk.f32.vlgmr.msra.gmra.mrb[4].mxu1 %vm437_vm2, %v670_v19 }
 0x3b2   : > { %v746_v21 = vpop.f32.mrb[4].mxu1 }
 0x3b3   : > { %v747_v22 = vadd.f32 %v746_v21, %v675_v20  ;;  %v928_v23 = vpop.f32.mrb[5].mxu1 }
 0x3b5   : > { %750 = vst [vmem:[%s269_s17] sm:$0x7] %v747_v22 }
 0x3b6   : > { %1033 = shalt.err (!%p1030_p3)
}
 0x3b7   : > { %s1034_s9 = scalar_lea.hbm %s1278_s21, 64  ;;  %s1038_s15 = scalar_lea.hbm %s1327_s7, 128 }
 0x3b8   : > { %p1035_p4 = scmp.ne.s32.totalorder %s1278_s21, %s1034_s9  ;;  %p1039_p9 = scmp.lt.u32.totalorder %s1278_s21, %s1327_s7 }
 0x3b9   : > { %p1040_p10 = scmp.lt.u32.totalorder %s1038_s15, %s1034_s9  ;;  %p1042_p12 = scmp.lt.u32.totalorder %s1034_s9, %s1278_s21 }
 0x3ba   : > { %p1036_p7 = pnand %p1035_p4, %p1167_p5 }
 0x3bb   : > { %p1041_p11 = por %p1040_p10, %p1039_p9 }
 0x3bc   : > { %p1037_p8 = pneg %p1036_p7 }
 0x3bd   : > { %p1043_p13 = por %p1042_p12, %p1041_p11 }
 0x3bf   : > { %p1044_p0 = pnand %p1043_p13, %p1037_p8 }
 0x3c1   : > { %1047 = shalt.err (!%p1044_p0)
}
 0x3c2   : > { %951 = dma.vmem_to_hbm [thread:$0]  (%p1167_p5), %s1280_s18, 64, %s1278_s21, %s752_s22  }
 0x3c3 PF: > { %p957_p1 = scmp.ge.s32.totalorder %s1082_s27, 2  ;;  %s777_s19 = sand.u32 1, %s1070_s24  }
 0x3c4   : > { %s778_s20 = scalar_lea.sflag [#allocation3], %s777_s19 }
 0x3c5   : > { %p954_p2 = pnand %p957_p1, %p1171_p6 }
 0x3c7   : > { %1065 = dma.done.wait (!%p954_p2), %s778_s20, 64  }
 0x3c8   : > { %1067 = vsyncadd (!%p954_p2), %s778_s20, 4294967232  ;;  %p17_p3 = scmp.ge.s32.totalorder %s1154_s30, 4   ;;  %s1330_s24 = smov %s1074_s25 }
 0x3c9   : > { %s1331_s25 = smov %s1078_s26  ;;  %s1332_s26 = smov %s1165_s10 }
 0x3ca   : > { %s1333_s27 = smov %s1154_s30  ;;  %19 = sbr.rel (!%p17_p3) target bundleno = 3 (0x3), region = 85 }
 0x3d1   :  { %783 = vsyncpa [#allocation3], 1 }
 0x3d2   :  { %785 = vsyncpa [#allocation3 + $0x1], 1 }

</bundles_post_ra>
